<compile_context>
chip_gen: v5e
topology: v5e:2x2
jax: 0.10.0
libtpu: 0.0.40
codegen_flags: <defaults>
</compile_context>

<pallas_src>
import functools

import jax
import jax.numpy as jnp
from jax.experimental import pallas as pl
from jax.experimental.pallas import tpu as pltpu

BN_EPS = 1e-5
MATMUL_DTYPE = jnp.bfloat16   # MXU operand dtype; everything else stays fp32.


def _channel_total(v, width, chan):
    """Per-channel all-sum over the W blocks of a [1, W*C] lane-dense row vector.

    Uses log2(W) lane-roll + add steps when W is a power of two (circular
    all-reduce by doubling); otherwise W-1 rolls.  All XLU/VPU work — no MXU.
    """
    wc = width * chan
    if width & (width - 1) == 0:
        shift = chan
        while shift < wc:
            v = v + pltpu.roll(v, shift, axis=1)
            shift *= 2
        return v
    total = v
    for k in range(1, width):
        total = total + pltpu.roll(v, k * chan, axis=1)
    return total


def _fused_senet_kernel(x_ref, mask_ref, m_ref, g_ref, b_ref, out_ref, act_ref,
                        *, spatial_w, chan):
    """One grid step == one Conv3x3 + BN(train) + ReLU layer.

    x_ref   : [R, WC]         input slab, R = N*H, WC = W*C (channel-padded)
    mask_ref: [R, 2]          border masks (col 0: y>0, col 1: y<H-1)
    m_ref   : [1, 3*WC, WC]   this layer's stacked block-banded conv weights
    g_ref   : [1, 1, WC]      this layer's BN gamma, pre-broadcast over W
    b_ref   : [1, 1, WC]      this layer's BN beta,  pre-broadcast over W
    out_ref : [R, WC]         final layer activation slab (written at last step)
    act_ref : [R, WC] VMEM    activation accumulator, persists across layers
    """
    l = pl.program_id(0)
    n_layers = pl.num_programs(0)
    rows, wc = act_ref.shape
    inv_count = 1.0 / float(rows * spatial_w)          # 1 / (N*H*W)

    @pl.when(l == 0)
    def _():
        act_ref[...] = x_ref[...]

    act = act_ref[...]
    masks = mask_ref[...]
    up_mask = masks[:, 0:1]        # zero at y == 0     (per image)
    dn_mask = masks[:, 1:2]        # zero at y == H - 1 (per image)

    # ---- Conv3x3 ("same", zero padding).  H shift via sublane roll + mask
    # ---- (XLU/VPU); W shift + channel mixing encoded in the block-banded
    # ---- weights.  All three ky taps fused into ONE K = 3*WC MXU matmul.
    # ---- Conv bias dropped: it cancels under training-mode BatchNorm.
    up = pltpu.roll(act, 1, axis=0) * up_mask            # row y-1
    dn = pltpu.roll(act, rows - 1, axis=0) * dn_mask     # row y+1
    lhs = jnp.concatenate([up, act, dn], axis=1).astype(m_ref.dtype)  # [R, 3WC]
    acc = jnp.dot(lhs, m_ref[0], preferred_element_type=jnp.float32)  # [R, WC]

    # ---- BatchNorm2d, training-mode batch stats (biased var), single pass.
    # ---- Per-channel pooling over W = lane-roll doubling, not an MXU matmul.
    rsum = jnp.sum(acc, axis=0, keepdims=True)             # [1, WC]
    rsumsq = jnp.sum(acc * acc, axis=0, keepdims=True)     # [1, WC]
    tot = _channel_total(rsum, spatial_w, chan)
    totsq = _channel_total(rsumsq, spatial_w, chan)
    mean = tot * inv_count
    var = jnp.maximum(totsq * inv_count - mean * mean, 0.0)
    scale = jax.lax.rsqrt(var + BN_EPS) * g_ref[0]
    shift = b_ref[0] - mean * scale

    # ---- affine + ReLU, fully lane-dense; keep for the next layer.
    new_act = jnp.maximum(acc * scale + shift, 0.0)
    act_ref[...] = new_act

    @pl.when(l == n_layers - 1)
    def _():
        out_ref[...] = new_act.astype(out_ref.dtype)


def _band_matrix(w_tap_cc, width, dx):
    """[W*C, W*C] block-banded matrix applying one (kx=dx) conv tap along W."""
    shift = jnp.eye(width, k=1 - dx, dtype=jnp.float32)   # xi = xo + dx - 1
    return jnp.kron(shift, w_tap_cc)


def _prepare_operands(x_nchw, params, matmul_dtype):
    """Layout plumbing: pack input + all layer params into lane-dense operands."""
    n, cin0, h, w = x_nchw.shape
    cout = params[0][0].shape[-1]
    c = max(cin0, cout)                    # common (zero-padded) channel width
    wc = w * c
    rows = n * h

    # NCHW -> NHWC -> zero-pad channels -> lane-dense [N*H, W*C] slab.
    x = jnp.transpose(x_nchw, (0, 2, 3, 1)).astype(jnp.float32)
    x = jnp.pad(x, ((0, 0), (0, 0), (0, 0), (0, c - cin0)))
    x_flat = x.reshape(rows, wc)

    m_list, g_list, b_list = [], [], []
    for (wk, _bias, gamma, beta) in params:      # conv bias: cancels under BN
        ci, co = wk.shape[2], wk.shape[3]
        wk_p = jnp.pad(wk.astype(jnp.float32),
                       ((0, 0), (0, 0), (0, c - ci), (0, c - co)))
        taps = [sum(_band_matrix(wk_p[dy, dx], w, dx) for dx in range(3))
                for dy in range(3)]
        m_list.append(jnp.concatenate(taps, axis=0))        # [3*WC, WC]
        g_list.append(jnp.tile(jnp.pad(gamma.astype(jnp.float32), (0, c - co),
                                       constant_values=1.0), w))
        b_list.append(jnp.tile(jnp.pad(beta.astype(jnp.float32), (0, c - co)), w))
    m_all = jnp.stack(m_list).astype(matmul_dtype)           # [L, 3*WC, WC]
    g_all = jnp.stack(g_list)[:, None, :]                    # [L, 1, WC]
    b_all = jnp.stack(b_list)[:, None, :]                    # [L, 1, WC]

    # Per-row H-border masks (0/1), one column per roll direction.
    y = jnp.arange(rows, dtype=jnp.int32) % h
    masks = jnp.stack([(y > 0), (y < h - 1)], axis=1).astype(jnp.float32)

    return x_flat, masks, m_all, g_all, b_all, (n, h, w, c, cout)


@jax.jit
def senet_forward(x_nchw, params):
    """SENet.forward (stack of Conv3x3 + BN(train) + ReLU). NCHW in, NCHW out."""
    if len(params) == 0:
        return x_nchw

    x_flat, masks, m_all, g_all, b_all, dims = _prepare_operands(
        x_nchw, params, MATMUL_DTYPE)
    n, h, w, c, cout = dims
    rows, wc = x_flat.shape
    num_layers = len(params)

    # Scheduling hint + explicit VMEM budget (double-buffered per-layer weights
    # + activation scratch + in/out slabs + headroom, capped well below 64 MiB).
    flops = 2 * num_layers * rows * (3 * wc) * wc
    bytes_accessed = (m_all.size * m_all.dtype.itemsize
                      + 2 * rows * wc * 4
                      + (g_all.size + b_all.size + masks.size) * 4)
    weight_bytes = 3 * wc * wc * m_all.dtype.itemsize
    act_bytes = rows * wc * 4
    vmem_limit = int(min(max(4 * weight_bytes + 8 * act_bytes + (8 << 20),
                             16 << 20),
                         64 << 20))

    kernel = functools.partial(_fused_senet_kernel, spatial_w=w, chan=c)
    out_flat = pl.pallas_call(
        kernel,
        out_shape=jax.ShapeDtypeStruct((rows, wc), jnp.float32),
        grid=(num_layers,),
        in_specs=[
            pl.BlockSpec((rows, wc), lambda l: (0, 0)),            # x slab
            pl.BlockSpec((rows, 2), lambda l: (0, 0)),             # border masks
            pl.BlockSpec((1, 3 * wc, wc), lambda l: (l, 0, 0)),    # layer weights
            pl.BlockSpec((1, 1, wc), lambda l: (l, 0, 0)),         # gamma
            pl.BlockSpec((1, 1, wc), lambda l: (l, 0, 0)),         # beta
        ],
        out_specs=pl.BlockSpec((rows, wc), lambda l: (0, 0)),
        scratch_shapes=[pltpu.VMEM((rows, wc), jnp.float32)],      # activations
        compiler_params=pltpu.CompilerParams(
            dimension_semantics=("arbitrary",),
            vmem_limit_bytes=vmem_limit),
        cost_estimate=pl.CostEstimate(flops=flops, transcendentals=0,
                                      bytes_accessed=bytes_accessed),
    )(x_flat, masks, m_all, g_all, b_all)

    out = out_flat.reshape(n, h, w, c)[..., :cout]   # drop padded channels
    return jnp.transpose(out, (0, 3, 1, 2))          # NHWC -> NCHW


def init_senet_params(key, in_channels, out_channels, blocks):
    """Per-block (conv_w [3,3,ci,co], conv_b [co], bn_gamma [co], bn_beta [co]),
    mirroring PyTorch's default Conv2d / BatchNorm2d initialisation."""
    params = []
    cin = in_channels
    for _ in range(blocks):
        key, kw, kb = jax.random.split(key, 3)
        bound = 1.0 / (cin * 9) ** 0.5
        w = jax.random.uniform(kw, (3, 3, cin, out_channels), jnp.float32,
                               minval=-bound, maxval=bound)
        b = jax.random.uniform(kb, (out_channels,), jnp.float32,
                               minval=-bound, maxval=bound)
        params.append((w, b,
                       jnp.ones((out_channels,), jnp.float32),
                       jnp.zeros((out_channels,), jnp.float32)))
        cin = out_channels
    return params


def senet_reference(x_nchw, params):
    """Pure-JAX reference (lax.conv + batch-stat BN + ReLU) for validation."""
    x = x_nchw.astype(jnp.float32)
    for (w, b, gamma, beta) in params:
        co = w.shape[-1]
        w_oihw = jnp.transpose(w, (3, 2, 0, 1))
        y = jax.lax.conv_general_dilated(
            x, w_oihw, window_strides=(1, 1), padding=((1, 1), (1, 1)),
            dimension_numbers=("NCHW", "OIHW", "NCHW"))
        y = y + b.reshape(1, co, 1, 1)
        mean = jnp.mean(y, axis=(0, 2, 3), keepdims=True)
        var = jnp.mean((y - mean) ** 2, axis=(0, 2, 3), keepdims=True)
        y = (y - mean) * jax.lax.rsqrt(var + BN_EPS)
        y = y * gamma.reshape(1, co, 1, 1) + beta.reshape(1, co, 1, 1)
        x = jnp.maximum(y, 0.0)
    return x


if __name__ == "__main__":
    key = jax.random.PRNGKey(0)
    in_channels, out_channels, blocks = 4, 8, 2
    N, H, W = 2, 16, 16

    kx, kp = jax.random.split(key)
    x = jax.random.normal(kx, (N, in_channels, H, W), jnp.float32)
    params = init_senet_params(kp, in_channels, out_channels, blocks)

    out = senet_forward(x, params)
    out = jax.block_until_ready(out)

    ref = senet_reference(x, params)
    assert out.shape == (N, out_channels, H, W), out.shape
    max_err = float(jnp.max(jnp.abs(out - ref)))
    # Tolerance reflects bf16 MXU operands (fp32 accumulation); fp32 matmuls
    # would validate at 1e-4.
    tol = 1e-4 if MATMUL_DTYPE == jnp.float32 else 3e-2
    assert jnp.allclose(out, ref, atol=tol, rtol=tol), max_err

    print("KERNEL_OK")
</pallas_src>

<mosaic_0001>
module attributes {stable_mosaic.version = 11 : i64} {
  func.func @_fused_senet_kernel(%arg0: i32, %arg1: memref<32x128xf32, #tpu.memory_space<vmem>>, %arg2: memref<32x2xf32, #tpu.memory_space<vmem>>, %arg3: memref<1x384x128xbf16, #tpu.memory_space<vmem>>, %arg4: memref<1x1x128xf32, #tpu.memory_space<vmem>>, %arg5: memref<1x1x128xf32, #tpu.memory_space<vmem>>, %arg6: memref<32x128xf32, #tpu.memory_space<vmem>>, %arg7: memref<32x128xf32, #tpu.memory_space<vmem>>) attributes {dimension_semantics = [#tpu.dimension_semantics<arbitrary>], iteration_bounds = array<i64: 2>, scalar_prefetch = 0 : i64, scratch_operands = 1 : i64, tpu.core_type = #tpu.core_type<tc>, window_params = [{pipeline_mode = #tpu.pipeline_mode<synchronous>, transform_indices = @transform_0, window_bounds = array<i64: 32, 128>}, {pipeline_mode = #tpu.pipeline_mode<synchronous>, transform_indices = @transform_1, window_bounds = array<i64: 32, 2>}, {transform_indices = @transform_2, window_bounds = array<i64: 1, 384, 128>}, {transform_indices = @transform_3, window_bounds = array<i64: 1, 1, 128>}, {transform_indices = @transform_4, window_bounds = array<i64: 1, 1, 128>}, {pipeline_mode = #tpu.pipeline_mode<synchronous>, transform_indices = @transform_5, window_bounds = array<i64: 32, 128>}]} {
    %c0_i32 = arith.constant 0 : i32
    %0 = arith.cmpi eq, %arg0, %c0_i32 : i32
    %1 = arith.extui %0 : i1 to i32
    %c0_i32_0 = arith.constant 0 : i32
    %2 = arith.cmpi ne, %1, %c0_i32_0 : i32
    scf.if %2 {
      %c0_28 = arith.constant 0 : index
      %c0_29 = arith.constant 0 : index
      %67 = vector.load %arg1[%c0_28, %c0_29] : memref<32x128xf32, #tpu.memory_space<vmem>>, vector<32x128xf32>
      %c0_30 = arith.constant 0 : index
      %c0_31 = arith.constant 0 : index
      %68 = vector.load %arg7[%c0_30, %c0_31] : memref<32x128xf32, #tpu.memory_space<vmem>>, vector<32x128xf32>
      tpu.vector_store %arg7[%c0_30, %c0_31], %67 {strides = array<i32>} : memref<32x128xf32, #tpu.memory_space<vmem>>, vector<32x128xf32>,
    } else {
    }
    %c0 = arith.constant 0 : index
    %c0_1 = arith.constant 0 : index
    %3 = vector.load %arg7[%c0, %c0_1] : memref<32x128xf32, #tpu.memory_space<vmem>>, vector<32x128xf32>
    %c0_2 = arith.constant 0 : index
    %c0_3 = arith.constant 0 : index
    %4 = vector.load %arg2[%c0_2, %c0_3] : memref<32x2xf32, #tpu.memory_space<vmem>>, vector<32x2xf32>
    %5 = vector.extract_strided_slice %4 {offsets = [0, 0], sizes = [32, 1], strides = [1, 1]} : vector<32x2xf32> to vector<32x1xf32>
    %6 = vector.extract_strided_slice %4 {offsets = [0, 1], sizes = [32, 1], strides = [1, 1]} : vector<32x2xf32> to vector<32x1xf32>
    %c1_i32 = arith.constant 1 : i32
    %7 = tpu.dynamic_rotate %3 by %c1_i32 dim 0 : vector<32x128xf32>, i32 -> vector<32x128xf32>
    %8 = vector.broadcast %5 : vector<32x1xf32> to vector<32x128xf32>
    %9 = arith.mulf %7, %8 : vector<32x128xf32>
    %c31_i32 = arith.constant 31 : i32
    %10 = tpu.dynamic_rotate %3 by %c31_i32 dim 0 : vector<32x128xf32>, i32 -> vector<32x128xf32>
    %11 = vector.broadcast %6 : vector<32x1xf32> to vector<32x128xf32>
    %12 = arith.mulf %10, %11 : vector<32x128xf32>
    %13 = tpu.concatenate %9, %3, %12 in 1 : vector<32x128xf32>, vector<32x128xf32>, vector<32x128xf32> -> vector<32x384xf32>
    %14 = arith.truncf %13 : vector<32x384xf32> to vector<32x384xbf16>
    %c0_4 = arith.constant 0 : index
    %c0_5 = arith.constant 0 : index
    %c0_6 = arith.constant 0 : index
    %15 = vector.load %arg3[%c0_4, %c0_5, %c0_6] : memref<1x384x128xbf16, #tpu.memory_space<vmem>>, vector<1x384x128xbf16>
    %16 = vector.shape_cast %15 : vector<1x384x128xbf16> to vector<384x128xbf16>
    %cst = arith.constant dense<0.000000e+00> : vector<32x128xf32>
    %17 = tpu.matmul %14, %16, %cst {dimension_numbers = #tpu.dot_dimension_numbers<[1], [0], [0], [1], [0, 0, 1, 1], [], []>} : vector<32x384xbf16>, vector<384x128xbf16>, vector<32x128xf32> -> vector<32x128xf32>
    %cst_7 = arith.constant dense<0.000000e+00> : vector<128xf32>
    %18 = vector.multi_reduction <add>, %17, %cst_7 [0] : vector<32x128xf32> to vector<128xf32>
    %19 = vector.shape_cast %18 : vector<128xf32> to vector<1x128xf32>
    %20 = arith.mulf %17, %17 : vector<32x128xf32>
    %cst_8 = arith.constant dense<0.000000e+00> : vector<128xf32>
    %21 = vector.multi_reduction <add>, %20, %cst_8 [0] : vector<32x128xf32> to vector<128xf32>
    %22 = vector.shape_cast %21 : vector<128xf32> to vector<1x128xf32>
    %c8_i32 = arith.constant 8 : i32
    %23 = tpu.dynamic_rotate %19 by %c8_i32 dim 1 : vector<1x128xf32>, i32 -> vector<1x128xf32>
    %24 = arith.addf %19, %23 : vector<1x128xf32>
    %c16_i32 = arith.constant 16 : i32
    %25 = tpu.dynamic_rotate %24 by %c16_i32 dim 1 : vector<1x128xf32>, i32 -> vector<1x128xf32>
    %26 = arith.addf %24, %25 : vector<1x128xf32>
    %c32_i32 = arith.constant 32 : i32
    %27 = tpu.dynamic_rotate %26 by %c32_i32 dim 1 : vector<1x128xf32>, i32 -> vector<1x128xf32>
    %28 = arith.addf %26, %27 : vector<1x128xf32>
    %c64_i32 = arith.constant 64 : i32
    %29 = tpu.dynamic_rotate %28 by %c64_i32 dim 1 : vector<1x128xf32>, i32 -> vector<1x128xf32>
    %30 = arith.addf %28, %29 : vector<1x128xf32>
    %c8_i32_9 = arith.constant 8 : i32
    %31 = tpu.dynamic_rotate %22 by %c8_i32_9 dim 1 : vector<1x128xf32>, i32 -> vector<1x128xf32>
    %32 = arith.addf %22, %31 : vector<1x128xf32>
    %c16_i32_10 = arith.constant 16 : i32
    %33 = tpu.dynamic_rotate %32 by %c16_i32_10 dim 1 : vector<1x128xf32>, i32 -> vector<1x128xf32>
    %34 = arith.addf %32, %33 : vector<1x128xf32>
    %c32_i32_11 = arith.constant 32 : i32
    %35 = tpu.dynamic_rotate %34 by %c32_i32_11 dim 1 : vector<1x128xf32>, i32 -> vector<1x128xf32>
    %36 = arith.addf %34, %35 : vector<1x128xf32>
    %c64_i32_12 = arith.constant 64 : i32
    %37 = tpu.dynamic_rotate %36 by %c64_i32_12 dim 1 : vector<1x128xf32>, i32 -> vector<1x128xf32>
    %38 = arith.addf %36, %37 : vector<1x128xf32>
    %cst_13 = arith.constant 0.001953125 : f32
    %39 = vector.broadcast %cst_13 : f32 to vector<1x128xf32>
    %40 = arith.mulf %30, %39 : vector<1x128xf32>
    %cst_14 = arith.constant 0.001953125 : f32
    %41 = vector.broadcast %cst_14 : f32 to vector<1x128xf32>
    %42 = arith.mulf %38, %41 : vector<1x128xf32>
    %43 = arith.mulf %40, %40 : vector<1x128xf32>
    %44 = arith.subf %42, %43 : vector<1x128xf32>
    %cst_15 = arith.constant 0.000000e+00 : f32
    %45 = vector.broadcast %cst_15 : f32 to vector<1x128xf32>
    %46 = arith.maximumf %44, %45 : vector<1x128xf32>
    %cst_16 = arith.constant 9.99999974E-6 : f32
    %47 = vector.broadcast %cst_16 : f32 to vector<1x128xf32>
    %48 = arith.addf %46, %47 : vector<1x128xf32>
    %49 = math.rsqrt %48 : vector<1x128xf32>
    %c0_17 = arith.constant 0 : index
    %c0_18 = arith.constant 0 : index
    %c0_19 = arith.constant 0 : index
    %50 = vector.load %arg4[%c0_17, %c0_18, %c0_19] : memref<1x1x128xf32, #tpu.memory_space<vmem>>, vector<1x1x128xf32>
    %51 = vector.shape_cast %50 : vector<1x1x128xf32> to vector<1x128xf32>
    %52 = arith.mulf %49, %51 : vector<1x128xf32>
    %c0_20 = arith.constant 0 : index
    %c0_21 = arith.constant 0 : index
    %c0_22 = arith.constant 0 : index
    %53 = vector.load %arg5[%c0_20, %c0_21, %c0_22] : memref<1x1x128xf32, #tpu.memory_space<vmem>>, vector<1x1x128xf32>
    %54 = vector.shape_cast %53 : vector<1x1x128xf32> to vector<1x128xf32>
    %55 = arith.mulf %40, %52 : vector<1x128xf32>
    %56 = arith.subf %54, %55 : vector<1x128xf32>
    %57 = vector.broadcast %52 : vector<1x128xf32> to vector<32x128xf32>
    %58 = arith.mulf %17, %57 : vector<32x128xf32>
    %59 = vector.broadcast %56 : vector<1x128xf32> to vector<32x128xf32>
    %60 = arith.addf %58, %59 : vector<32x128xf32>
    %cst_23 = arith.constant 0.000000e+00 : f32
    %61 = vector.broadcast %cst_23 : f32 to vector<32x128xf32>
    %62 = arith.maximumf %60, %61 : vector<32x128xf32>
    %c0_24 = arith.constant 0 : index
    %c0_25 = arith.constant 0 : index
    %63 = vector.load %arg7[%c0_24, %c0_25] : memref<32x128xf32, #tpu.memory_space<vmem>>, vector<32x128xf32>
    tpu.vector_store %arg7[%c0_24, %c0_25], %62 {strides = array<i32>} : memref<32x128xf32, #tpu.memory_space<vmem>>, vector<32x128xf32>,
    %c1_i32_26 = arith.constant 1 : i32
    %64 = arith.cmpi eq, %arg0, %c1_i32_26 : i32
    %65 = arith.extui %64 : i1 to i32
    %c0_i32_27 = arith.constant 0 : i32
    %66 = arith.cmpi ne, %65, %c0_i32_27 : i32
    scf.if %66 {
      %c0_28 = arith.constant 0 : index
      %c0_29 = arith.constant 0 : index
      %67 = vector.load %arg6[%c0_28, %c0_29] : memref<32x128xf32, #tpu.memory_space<vmem>>, vector<32x128xf32>
      tpu.vector_store %arg6[%c0_28, %c0_29], %62 {strides = array<i32>} : memref<32x128xf32, #tpu.memory_space<vmem>>, vector<32x128xf32>,
    } else {
    }
    return
  }
  func.func @transform_0(%arg0: i32) -> (i32, i32) {
    %c0_i32 = arith.constant 0 : i32
    %c0_i32_0 = arith.constant 0 : i32
    %c0_i32_1 = arith.constant 0 : i32
    return %c0_i32, %c0_i32_0 : i32, i32
  }
  func.func @transform_1(%arg0: i32) -> (i32, i32) {
    %c0_i32 = arith.constant 0 : i32
    %c0_i32_0 = arith.constant 0 : i32
    %c0_i32_1 = arith.constant 0 : i32
    return %c0_i32, %c0_i32_0 : i32, i32
  }
  func.func @transform_2(%arg0: i32) -> (i32, i32, i32) {
    %c0_i32 = arith.constant 0 : i32
    %c0_i32_0 = arith.constant 0 : i32
    %c0_i32_1 = arith.constant 0 : i32
    return %arg0, %c0_i32, %c0_i32_0 : i32, i32, i32
  }
  func.func @transform_3(%arg0: i32) -> (i32, i32, i32) {
    %c0_i32 = arith.constant 0 : i32
    %c0_i32_0 = arith.constant 0 : i32
    %c0_i32_1 = arith.constant 0 : i32
    return %arg0, %c0_i32, %c0_i32_0 : i32, i32, i32
  }
  func.func @transform_4(%arg0: i32) -> (i32, i32, i32) {
    %c0_i32 = arith.constant 0 : i32
    %c0_i32_0 = arith.constant 0 : i32
    %c0_i32_1 = arith.constant 0 : i32
    return %arg0, %c0_i32, %c0_i32_0 : i32, i32, i32
  }
  func.func @transform_5(%arg0: i32) -> (i32, i32) {
    %c0_i32 = arith.constant 0 : i32
    %c0_i32_0 = arith.constant 0 : i32
    %c0_i32_1 = arith.constant 0 : i32
    return %c0_i32, %c0_i32_0 : i32, i32
  }
}

</mosaic_0001>

<bundles_post_ra>
// kernel: tile.23
= control target key start
LH: loop header
LB: loop body
LE: loop exit
PB: predicated region body
PF: predicated region fallthrough
CT: control target
= control target key end

     0   :  { %s28_s0 = inlined_call_operand.vmem [shape: f32[8], index: 0, kind: input, shape index: {}]   ;;  %s29_s1 = inlined_call_operand.vmem [shape: f32[16,8], index: 1, kind: output, shape index: {}]  }
   0x1   :  { %v4_v0 = vld [vmem:[%s28_s0] ss:$0 sm:$0xff] }
   0x2   :  { %5 = vst [vmem:[%s29_s1] sm:$0xff] %v4_v0 }
   0x3   :  { %8 = vst [vmem:[%s29_s1 + $0x8] sm:$0xff] %v4_v0 }

// kernel: tile.36
= control target key start
LH: loop header
LB: loop body
LE: loop exit
PB: predicated region body
PF: predicated region fallthrough
CT: control target
= control target key end

     0   :  { %s131_s10 = smov 120   ;;  %s132_s11 = smov 104   ;;  %vm3_vm0 = vcmask 64512   ;;  %vm9_vm1 = vcmask 1048512   ;;  %vm15_vm2 = vcmask 982912   ;;  %vm21_vm3 = vcmask 917312   ;;  %s207_s0 = inlined_call_operand.vmem [shape: f32[16,8], index: 0, kind: input, shape index: {}]   ;;  %s208_s1 = inlined_call_operand.vmem [shape: f32[1,128], index: 1, kind: output, shape index: {}]  }
   0x1   :  { %v101_v0 = vld [vmem:[%s207_s0 + $0xf] sm:$0x1]   ;;  %v103_v1 = vld [vmem:[%s207_s0 + $0xd] sm:$0x1]   ;;  %v105_v2 = vld [vmem:[%s207_s0 + $0xb] sm:$0x1]  }
   0x2   :  { %7 = vrot.lane.b32.xlu0 %v101_v0, %s131_s10  ;;  %19 = vrot.lane.b32.xlu1 %v103_v1, %s132_s11  ;;  %s133_s14 = smov 88   ;;  %v102_v3 = vld [vmem:[%s207_s0 + $0xe] sm:$0x1]   ;;  %v104_v4 = vld [vmem:[%s207_s0 + $0xc] sm:$0x1]   ;;  %s134_s19 = smov 112  }
   0x3   :  { %31 = vrot.lane.b32.xlu2 %v105_v2, %s133_s14  ;;  %s135_s20 = smov 96   ;;  %v106_v5 = vld [vmem:[%s207_s0 + $0xa] sm:$0x1]   ;;  %s136_s23 = smov 80   ;;  %v107_v6 = vld [vmem:[%s207_s0 + $0x9] sm:$0x1]  }
   0x4   :  { %v108_v7 = vld [vmem:[%s207_s0 + $0x8] sm:$0x1]   ;;  %s137_s28 = smov 72   ;;  %s138_s29 = smov 64   ;;  %v109_v8 = vld [vmem:[%s207_s0 + $0x7] sm:$0x1]  }
   0x5   :  { %s139_s3 = smov 56   ;;  %v110_v9 = vld [vmem:[%s207_s0 + $0x6] sm:$0x1]   ;;  %v111_v10 = vld [vmem:[%s207_s0 + $0x5] sm:$0x1]   ;;  %s140_s8 = smov 48  }
   0x6   :  { %s141_s9 = smov 40   ;;  %v112_v11 = vld [vmem:[%s207_s0 + $0x4] sm:$0x1]   ;;  %s142_s12 = smov 32   ;;  %v113_v12 = vld [vmem:[%s207_s0 + $0x3] sm:$0x1]  }
   0x7   :  { %v114_v13 = vld [vmem:[%s207_s0 + $0x2] sm:$0x1]   ;;  %s143_s17 = smov 24   ;;  %s144_s18 = smov 16   ;;  %v115_v14 = vld [vmem:[%s207_s0 + $0x1] sm:$0x1]  }
   0x8   :  { %s145_s21 = smov 8   ;;  %v2_v15 = vld [vmem:[%s207_s0] sm:$0x1]   ;;  %vm27_vm4 = vcmask 851712   ;;  %vm33_vm5 = vcmask 786112   ;;  %vm39_vm6 = vcmask 720512  }
   0x9   :  { %4 = vst.msk [vmem:[#allocation0] sm:$0x1] %vm3_vm0, %v2_v15   ;;  %vm45_vm7 = vcmask 654912   ;;  %vm51_vm8 = vcmask 589312   ;;  %vm57_vm9 = vcmask 523712   ;;  %vm63_vm10 = vcmask 458112  }
   0xa   :  { %13 = vrot.lane.b32.xlu0 %v102_v3, %s134_s19  ;;  %25 = vrot.lane.b32.xlu1 %v104_v4, %s135_s20  ;;  %vm69_vm11 = vcmask 392512   ;;  %vm75_vm12 = vcmask 326912   ;;  %vm81_vm13 = vcmask 261312   ;;  %vm87_vm14 = vcmask 195712  }
   0xb   :  { %37 = vrot.lane.b32.xlu2 %v106_v5, %s136_s23  ;;  %vm93_vm15 = vcmask 130112  }
  0x12   :  { %43 = vrot.lane.b32.xlu0 %v107_v6, %s137_s28  ;;  %49 = vrot.lane.b32.xlu1 %v108_v7, %s138_s29 }
  0x13   :  { %55 = vrot.lane.b32.xlu2 %v109_v8, %s139_s3 }
  0x1a   :  { %61 = vrot.lane.b32.xlu0 %v110_v9, %s140_s8  ;;  %67 = vrot.lane.b32.xlu1 %v111_v10, %s141_s9 }
  0x1b   :  { %73 = vrot.lane.b32.xlu2 %v112_v11, %s142_s12 }
  0x22   :  { %79 = vrot.lane.b32.xlu0 %v113_v12, %s143_s17  ;;  %85 = vrot.lane.b32.xlu1 %v114_v13, %s144_s18 }
  0x23   :  { %91 = vrot.lane.b32.xlu2 %v115_v14, %s145_s21 }
  0x5d   :  { %v32_v16 = vpop.permute.xlu2 %31  }
  0x65   :  { %v38_v17 = vpop.permute.xlu2 %37  }
  0x6d   :  { %v56_v18 = vpop.permute.xlu2 %55  }
  0x74   :  { %v8_v19 = vpop.permute.xlu0 %7   ;;  %v20_v20 = vpop.permute.xlu1 %19  }
  0x75   :  { %10 = vst.msk [vmem:[#allocation0] sm:$0x1] %vm9_vm1, %v8_v19   ;;  %v74_v21 = vpop.permute.xlu2 %73  }
  0x7c   :  { %v14_v22 = vpop.permute.xlu0 %13   ;;  %v26_v23 = vpop.permute.xlu1 %25  }
  0x7d   :  { %16 = vst.msk [vmem:[#allocation0] sm:$0x1] %vm15_vm2, %v14_v22   ;;  %v92_v24 = vpop.permute.xlu2 %91  }
  0x7e   :  { %22 = vst.msk [vmem:[#allocation0] sm:$0x1] %vm21_vm3, %v20_v20  }
  0x7f   :  { %28 = vst.msk [vmem:[#allocation0] sm:$0x1] %vm27_vm4, %v26_v23  }
  0x80   :  { %34 = vst.msk [vmem:[#allocation0] sm:$0x1] %vm33_vm5, %v32_v16  }
  0x81   :  { %40 = vst.msk [vmem:[#allocation0] sm:$0x1] %vm39_vm6, %v38_v17  }
  0x84   :  { %v44_v25 = vpop.permute.xlu0 %43   ;;  %v50_v26 = vpop.permute.xlu1 %49  }
  0x85   :  { %46 = vst.msk [vmem:[#allocation0] sm:$0x1] %vm45_vm7, %v44_v25  }
  0x86   :  { %52 = vst.msk [vmem:[#allocation0] sm:$0x1] %vm51_vm8, %v50_v26  }
  0x87   :  { %58 = vst.msk [vmem:[#allocation0] sm:$0x1] %vm57_vm9, %v56_v18  }
  0x8c   :  { %v62_v27 = vpop.permute.xlu0 %61   ;;  %v68_v28 = vpop.permute.xlu1 %67  }
  0x8d   :  { %64 = vst.msk [vmem:[#allocation0] sm:$0x1] %vm63_vm10, %v62_v27  }
  0x8e   :  { %70 = vst.msk [vmem:[#allocation0] sm:$0x1] %vm69_vm11, %v68_v28  }
  0x8f   :  { %76 = vst.msk [vmem:[#allocation0] sm:$0x1] %vm75_vm12, %v74_v21  }
  0x94   :  { %v80_v29 = vpop.permute.xlu0 %79   ;;  %v86_v30 = vpop.permute.xlu1 %85  }
  0x95   :  { %82 = vst.msk [vmem:[#allocation0] sm:$0x1] %vm81_vm13, %v80_v29  }
  0x96   :  { %88 = vst.msk [vmem:[#allocation0] sm:$0x1] %vm87_vm14, %v86_v30  }
  0x97   :  { %94 = vst.msk [vmem:[#allocation0] sm:$0x1] %vm93_vm15, %v92_v24  }
  0x9e   :  { %v97_v31 = vld [vmem:[#allocation0] sm:$0x1] }
  0x9f   :  { %100 = vst [vmem:[%s208_s1] sm:$0x1] %v97_v31 }

// kernel: senet_forward.1
= control target key start
LH: loop header
LB: loop body
LE: loop exit
PB: predicated region body
PF: predicated region fallthrough
CT: control target
= control target key end

     0   :  { %s920_s18 = smov 0   ;;  %s1055_s0 = inlined_call_operand.vmem [shape: f32[32,128], index: 0, kind: input, shape index: {}]   ;;  %s1056_s1 = inlined_call_operand.vmem [shape: f32[32,2], index: 1, kind: input, shape index: {}]   ;;  %s1057_s2 = inlined_call_operand.vmem [shape: bf16[2,384,128], index: 2, kind: input, shape index: {}]   ;;  %s1058_s3 = inlined_call_operand.vmem [shape: f32[2,1,128], index: 3, kind: input, shape index: {}]   ;;  %s1059_s4 = inlined_call_operand.vmem [shape: f32[2,1,128], index: 4, kind: input, shape index: {}]   ;;  %s1060_s5 = inlined_call_operand.vmem [shape: f32[32,128], index: 5, kind: output, shape index: {}]  }
   0x1 LB: > { %s926_s19 = sadd.s32 4294967295, %s882_s18   ;;  %p721_p0 = scmp.ge.s32.totalorder %s882_s18, 1  ;;  %s882_s18 = sphi %s920_s18, %s15_s18  }
   0x2   : > { %p198_p1 = scmp.lt.s32.totalorder %s882_s18, 3 }
   0x4   : > { %p199_p2 = pnand %p721_p0, %p198_p1 }
   0x5   : > { %p227_p3 = scmp.lt.s32.totalorder (!%p199_p2), %s926_s19, 1  ;;  %p723_p4 = scmp.ne.s32.totalorder (!%p199_p2), %s926_s19, 0 }
   0x6   : > { %202 = sbr.rel (%p199_p2) target bundleno = 815 (0x32f), region = 40 }
   0xb   : > { %s932_s20 = scalar_select %p227_p3, %s926_s19, 1 }
   0xc   : > { %241 = sbr.rel (%p723_p4) target bundleno = 22 (0x16), region = 44 }
   0xd   : > { %s855_s21 = smul.u32 192, %s932_s20  ;;  %s234_s24 = scalar_lea.vmem %s1058_s3, %s932_s20 }
   0xe   : > { %s237_s27 = scalar_lea.vmem %s1059_s4, %s932_s20 }
   0xf   : > { %s946_s30 = scalar_lea.vmem %s1057_s2, %s855_s21 }
  0x11   : > { %v242_v0 = vld [vmem:[%s1055_s0] sm:$0xff]  ;;  %v243_v1 = vld [vmem:[%s1055_s0 + $0x8] sm:$0xff]  ;;  %v244_v2 = vld [vmem:[%s1055_s0 + $0x10] sm:$0xff] }
  0x12   : > { %246 = vst [vmem:[#allocation2 + $0x10] sm:$0xff] %v242_v0  ;;  %v245_v3 = vld [vmem:[%s1055_s0 + $0x18] sm:$0xff] }
  0x13   : > { %247 = vst [vmem:[#allocation2] sm:$0xff] %v243_v1 }
  0x14   : > { %248 = vst [vmem:[#allocation2 + $0x18] sm:$0xff] %v244_v2 }
  0x15   : > { %249 = vst [vmem:[#allocation2 + $0x8] sm:$0xff] %v245_v3 }
  0x16 PF: > { %v256_v4 = vld [vmem:[%s1056_s1 + $0x10] sm:$0xff]  ;;  %v254_v5 = vld [vmem:[%s1056_s1] sm:$0xff]  ;;  %v884_v6 = vmov 1   ;;  %v885_v7 = vmov 0   ;;  %v838_v8 = vld [vmem:[%s946_s30 + $0x78] sm:$0xff]  ;;  %v262_v36 = vlaneseq  ;;  %s886_s26 = smov 8  }
  0x17   : > { %870 = vset.pattern.permute.xlu0 %v884_v6  ;;  %871 = vset.pattern.permute.xlu1 %v885_v7  ;;  %v830_v9 = vld [vmem:[%s946_s30 + $0x38] sm:$0xff]  ;;  %v837_v10 = vld [vmem:[%s946_s30 + $0x70] sm:$0xff]  ;;  %v255_v15 = vld [vmem:[%s1056_s1 + $0x8] sm:$0xff]  ;;  %s887_s28 = smov 16   ;;  %s888_s29 = smov 32  }
  0x18   : > { %281 = vperm.xlu1 %871, %v256_v4   ;;  %303 = vperm.xlu0 %870, %v254_v5   ;;  %v846_v11 = vld [vmem:[%s946_s30 + $0xb8] sm:$0xff]  ;;  %v829_v12 = vld [vmem:[%s946_s30 + $0x30] sm:$0xff]  ;;  %v836_v16 = vld [vmem:[%s946_s30 + $0x68] sm:$0xff]  ;;  %v263_v39 = vshrl.u32 %v262_v36, 7  ;;  %p820_p5 = scmp.ne.s32.totalorder %s926_s19, 1 }
  0x19   : > { %872 = vset.pattern.permute.xlu2 %v885_v7  ;;  %539 = vmatpush.bf16.msra.mxu1 %v838_v8  ;;  %v845_v13 = vld [vmem:[%s946_s30 + $0xb0] sm:$0xff]  ;;  %v257_v14 = vld [vmem:[%s1056_s1 + $0x18] sm:$0xff]  ;;  %v828_v17 = vld [vmem:[%s946_s30 + $0x28] sm:$0xff] }
  0x1a   : > { %271 = vperm.xlu2 %872, %v254_v5   ;;  %520 = vmatpush.bf16.msra.mxu0 %v830_v9  ;;  %v844_v18 = vld [vmem:[%s946_s30 + $0xa8] sm:$0xff]  ;;  %v835_v19 = vld [vmem:[%s946_s30 + $0x60] sm:$0xff]  ;;  %v834_v22 = vld [vmem:[%s946_s30 + $0x58] sm:$0xff]  ;;  %vm264_vm0 = vcmp.lt.s32.totalorder %v263_v39, 1  ;;  %vm297_vm1 = vcmp.lt.s32.totalorder %v263_v39, 7 }
  0x1b   : > { %847 = vmatpush.bf16.msra.mxu3 %v830_v9  ;;  %558 = vmatpush.bf16.msra.mxu2 %v846_v11  ;;  %v827_v20 = vld [vmem:[%s946_s30 + $0x20] sm:$0xff]  ;;  %v826_v23 = vld [vmem:[%s946_s30 + $0x18] sm:$0xff]  ;;  %v833_v24 = vld [vmem:[%s946_s30 + $0x50] sm:$0xff] }
  0x1c   : > { %v843_v21 = vld [vmem:[%s946_s30 + $0xa0] sm:$0xff]  ;;  %v832_v25 = vld [vmem:[%s946_s30 + $0x48] sm:$0xff]  ;;  %v825_v26 = vld [vmem:[%s946_s30 + $0x10] sm:$0xff] }
  0x1d   : > { %540 = vmatpush.bf16.msra.mxu1 %v837_v10  ;;  %v842_v27 = vld [vmem:[%s946_s30 + $0x98] sm:$0xff]  ;;  %v831_v28 = vld [vmem:[%s946_s30 + $0x40] sm:$0xff]  ;;  %v250_v29 = vld [vmem:[#allocation2 + $0x10] sm:$0xff] }
  0x1e   : > { %521 = vmatpush.bf16.msra.mxu0 %v829_v12  ;;  %v251_v30 = vld [vmem:[#allocation2] sm:$0xff]  ;;  %v824_v31 = vld [vmem:[%s946_s30 + $0x8] sm:$0xff]  ;;  %v841_v32 = vld [vmem:[%s946_s30 + $0x90] sm:$0xff]  ;;  %v258_v41 = vrot.slane %v250_v29, 7  ;;  %v293_v55 = vrot.slane %v250_v29, 1 }
  0x1f   : > { %848 = vmatpush.bf16.msra.mxu3 %v829_v12  ;;  %559 = vmatpush.bf16.msra.mxu2 %v845_v13  ;;  %v323_v33 = vpack.c.bf16 %v251_v30, %v250_v29  ;;  %v823_v34 = vld [vmem:[%s946_s30] sm:$0xff]  ;;  %v840_v35 = vld [vmem:[%s946_s30 + $0x88] sm:$0xff]  ;;  %v259_v43 = vrot.slane %v251_v30, 7  ;;  %v252_v45 = vld [vmem:[#allocation2 + $0x18] sm:$0xff]  ;;  %v294_v56 = vrot.slane %v251_v30, 1 }
  0x20   : > { %286 = vperm.xlu1 %871, %v257_v14   ;;  %307 = vperm.xlu0 %870, %v255_v15   ;;  %v253_v37 = vld [vmem:[#allocation2 + $0x8] sm:$0xff]  ;;  %v839_v38 = vld [vmem:[%s946_s30 + $0x80] sm:$0xff]  ;;  %v260_v53 = vrot.slane %v252_v45, 7  ;;  %v295_v57 = vrot.slane %v252_v45, 1  ;;  %s889_s30 = smov 64  }
  0x21   : > { %541 = vmatpush.bf16.msra.mxu1 %v836_v16  ;;  %v261_v42 = vrot.slane %v253_v37, 7  ;;  %v267_v46 = vsel %vm264_vm0, %v258_v41, %v259_v43  ;;  %v326_v48 = vpack.c.bf16 %v253_v37, %v252_v45  ;;  %v300_v59 = vsel %vm297_vm1, %v293_v55, %v294_v56 }
  0x22   : > { %276 = vperm.xlu2 %872, %v255_v15   ;;  %522 = vmatpush.bf16.msra.mxu0 %v828_v17  ;;  %v266_v58 = vsel %vm264_vm0, %v259_v43, %v260_v53  ;;  %v299_v61 = vsel %vm297_vm1, %v294_v56, %v295_v57 }
  0x23   : > { %849 = vmatpush.bf16.msra.mxu3 %v828_v17  ;;  %560 = vmatpush.bf16.msra.mxu2 %v844_v18  ;;  %v268_v44 = vsel %vm264_vm0, %v261_v42, %v258_v41  ;;  %v265_v60 = vsel %vm264_vm0, %v260_v53, %v261_v42 }
  0x25   : > { %542 = vmatpush.bf16.msra.mxu1 %v835_v19 }
  0x26   : > { %523 = vmatpush.bf16.msra.mxu0 %v827_v20 }
  0x27   : > { %850 = vmatpush.bf16.msra.mxu3 %v827_v20  ;;  %561 = vmatpush.bf16.msra.mxu2 %v843_v21 }
  0x28   : > { %873 = vset.pattern.permute.xlu1 %v884_v6  ;;  %311 = vperm.xlu0 %870, %v256_v4   ;;  %v296_v6 = vrot.slane %v253_v37, 1 }
  0x29   : > { %315 = vperm.xlu1 %873, %v257_v14   ;;  %543 = vmatpush.bf16.msra.mxu1 %v834_v22 }
  0x2a   : > { %524 = vmatpush.bf16.msra.mxu0 %v826_v23  ;;  %v298_v8 = vsel %vm297_vm1, %v295_v57, %v296_v6  ;;  %v301_v10 = vsel %vm297_vm1, %v296_v6, %v293_v55 }
  0x2b   : > { %851 = vmatpush.bf16.msra.mxu3 %v826_v23  ;;  %562 = vmatpush.bf16.msra.mxu2 %v842_v27 }
  0x2d   : > { %544 = vmatpush.bf16.msra.mxu1 %v833_v24 }
  0x2e   : > { %525 = vmatpush.bf16.msra.mxu0 %v825_v26 }
  0x2f   : > { %852 = vmatpush.bf16.msra.mxu3 %v825_v26  ;;  %563 = vmatpush.bf16.msra.mxu2 %v841_v32 }
  0x31   : > { %545 = vmatpush.bf16.msra.mxu1 %v832_v25 }
  0x32   : > { %526 = vmatpush.bf16.msra.mxu0 %v824_v31 }
  0x33   : > { %853 = vmatpush.bf16.msra.mxu3 %v824_v31  ;;  %564 = vmatpush.bf16.msra.mxu2 %v840_v35 }
  0x35   : > { %546 = vmatpush.bf16.msra.mxu1 %v831_v28 }
  0x36   : > { %527 = vmatpush.bf16.msra.mxu0 %v823_v34 }
  0x37   : > { %854 = vmatpush.bf16.msra.mxu3 %v823_v34  ;;  %565 = vmatpush.bf16.msra.mxu2 %v839_v38 }
  0x38   : > { %547 = vmatmul.bf16.vlgmr.msra.gmra.mxu1 %v323_v33 }
  0x48   : > { %552 = vmatmul.bf16.gmra.mxu1 %v326_v48 }
  0x74   : > { %v272_v40 = vpop.permute.xlu2 %271 }
  0x75   : > { %v289_v47 = vmul.f32 %v272_v40, %v268_v44 }
  0x7c   : > { %v277_v49 = vpop.permute.xlu2 %276 }
  0x7d   : > { %v290_v50 = vmul.f32 %v277_v49, %v267_v46 }
  0x7f   : > { %v322_v51 = vpack.c.bf16 %v290_v50, %v289_v47 }
  0x81   : > { %528 = vmatmul.bf16.vlgmr.msra.gmra.mxu0 %v322_v51 }
  0x8a   : > { %v282_v52 = vpop.permute.xlu1 %281  ;;  %v304_v54 = vpop.permute.xlu0 %303 }
  0x8b   : > { %v291_v62 = vmul.f32 %v282_v52, %v266_v58  ;;  %v318_v1 = vmul.f32 %v304_v54, %v300_v59 }
  0x92   : > { %v287_v63 = vpop.permute.xlu1 %286  ;;  %v308_v0 = vpop.permute.xlu0 %307 }
  0x93   : > { %v292_v2 = vmul.f32 %v287_v63, %v265_v60  ;;  %v319_v3 = vmul.f32 %v308_v0, %v299_v61 }
  0x95   : > { %v325_v4 = vpack.c.bf16 %v292_v2, %v291_v62  ;;  %v324_v5 = vpack.c.bf16 %v319_v3, %v318_v1 }
  0x97   : > { %533 = vmatmul.bf16.vlgmr.msra.gmra.mxu3 %v325_v4  ;;  %566 = vmatmul.bf16.vlgmr.msra.gmra.mxu2 %v324_v5 }
  0x9a   : > { %v312_v7 = vpop.permute.xlu0 %311 }
  0x9b   : > { %v316_v9 = vpop.permute.xlu1 %315  ;;  %v320_v11 = vmul.f32 %v312_v7, %v298_v8 }
  0x9c   : > { %v321_v12 = vmul.f32 %v316_v9, %v301_v10 }
  0x9e   : > { %v327_v13 = vpack.c.bf16 %v321_v12, %v320_v11 }
  0xa7   : > { %571 = vmatmul.bf16.gmra.mxu2 %v327_v13 }
  0xb5   : > { %v548_v14 = vpop.f32.mrf.mxu1 }
  0xbd   : > { %v550_v15 = vpop.f32.mrf.mxu1 }
  0xc5   : > { %v553_v20 = vpop.f32.mrf.mxu1 }
  0xcd   : > { %v555_v30 = vpop.f32.mrf.mxu1 }
  0xfe   : > { %v529_v17 = vpop.f32.mrf.mxu0 }
  0xff   : > { %v549_v22 = vadd.f32 %v548_v14, %v529_v17 }
 0x106   : > { %v531_v21 = vpop.f32.mrf.mxu0 }
 0x107   : > { %v551_v23 = vadd.f32 %v550_v15, %v531_v21 }
 0x11a   : > { %v567_v16 = vpop.f32.mrf.mxu2  ;;  %v534_v19 = vpop.f32.mrf.mxu3 }
 0x11b   : > { %v554_v25 = vadd.f32 %v553_v20, %v534_v19  ;;  %v1007_v27 = vadd.f32 %v567_v16, %v549_v22  ;;  %v639_v19 = vld [vmem:[%s234_s24] sm:$0x1] }
 0x11d   : > { %v586_v32 = vmul.f32 %v1007_v27, %v1007_v27 }
 0x122   : > { %v569_v18 = vpop.f32.mrf.mxu2  ;;  %v536_v29 = vpop.f32.mrf.mxu3 }
 0x123   : > { %v1005_v26 = vadd.f32 %v569_v18, %v551_v23  ;;  %v556_v33 = vadd.f32 %v555_v30, %v536_v29  ;;  %v641_v23 = vld [vmem:[%s237_s27] sm:$0x1] }
 0x125   : > { %v587_v31 = vmul.f32 %v1005_v26, %v1005_v26  ;;  %v577_v34 = vadd.f32 %v1005_v26, %v1007_v27 }
 0x127   : > { %v590_v37 = vadd.f32 %v587_v31, %v586_v32 }
 0x12a   : > { %v572_v24 = vpop.f32.mrf.mxu2 }
 0x12b   : > { %v1009_v28 = vadd.f32 %v572_v24, %v554_v25 }
 0x12d   : > { %v588_v35 = vmul.f32 %v1009_v28, %v1009_v28  ;;  %v578_v38 = vadd.f32 %v577_v34, %v1009_v28 }
 0x12f   : > { %v591_v40 = vadd.f32 %v590_v37, %v588_v35 }
 0x132   : > { %v574_v36 = vpop.f32.mrf.mxu2 }
 0x133   : > { %v1020_v39 = vadd.f32 %v574_v36, %v556_v33 }
 0x135   : > { %v579_v41 = vadd.f32 %v578_v38, %v1020_v39  ;;  %v589_v42 = vmul.f32 %v1020_v39, %v1020_v39 }
 0x137   : > { %v580_v43 = vrot.slane %v579_v41, 4  ;;  %v592_v44 = vadd.f32 %v591_v40, %v589_v42 }
 0x139   : > { %v581_v45 = vadd.f32 %v580_v43, %v579_v41  ;;  %v593_v46 = vrot.slane %v592_v44, 4 }
 0x13b   : > { %v582_v47 = vrot.slane %v581_v45, 2  ;;  %v594_v48 = vadd.f32 %v593_v46, %v592_v44 }
 0x13d   : > { %v583_v49 = vadd.f32 %v582_v47, %v581_v45  ;;  %v595_v50 = vrot.slane %v594_v48, 2 }
 0x13f   : > { %v584_v51 = vrot.slane %v583_v49, 1  ;;  %v596_v52 = vadd.f32 %v595_v50, %v594_v48 }
 0x141   : > { %v585_v53 = vadd.f32 %v584_v51, %v583_v49  ;;  %v597_v54 = vrot.slane %v596_v52, 1 }
 0x143   : > { %599 = vrot.lane.b32.xlu2 %v585_v53, %s886_s26  ;;  %v598_v55 = vadd.f32 %v597_v54, %v596_v52 }
 0x145   : > { %611 = vrot.lane.b32.xlu0 %v598_v55, %s886_s26 }
 0x19d   : > { %v600_v56 = vpop.permute.xlu2 %599 }
 0x19e   : > { %v601_v57 = vadd.f32 %v600_v56, %v585_v53 }
 0x1a0   : > { %602 = vrot.lane.b32.xlu1 %v601_v57, %s887_s28 }
 0x1b7   : > { %v612_v58 = vpop.permute.xlu0 %611 }
 0x1b8   : > { %v613_v59 = vadd.f32 %v612_v58, %v598_v55 }
 0x1ba   : > { %614 = vrot.lane.b32.xlu2 %v613_v59, %s887_s28 }
 0x212   : > { %v603_v60 = vpop.permute.xlu1 %602 }
 0x213   : > { %v604_v61 = vadd.f32 %v603_v60, %v601_v57 }
 0x214   : > { %v615_v62 = vpop.permute.xlu2 %614 }
 0x215   : > { %v616_v63 = vadd.f32 %v615_v62, %v613_v59  ;;  %605 = vrot.lane.b32.xlu0 %v604_v61, %s888_s29 }
 0x217   : > { %617 = vrot.lane.b32.xlu1 %v616_v63, %s888_s29 }
 0x287   : > { %v606_v0 = vpop.permute.xlu0 %605 }
 0x288   : > { %v607_v1 = vadd.f32 %v606_v0, %v604_v61 }
 0x289   : > { %v618_v2 = vpop.permute.xlu1 %617 }
 0x28a   : > { %v619_v3 = vadd.f32 %v618_v2, %v616_v63  ;;  %608 = vrot.lane.b32.xlu2 %v607_v1, %s889_s30 }
 0x28c   : > { %620 = vrot.lane.b32.xlu0 %v619_v3, %s889_s30 }
 0x2e4   : > { %v609_v4 = vpop.permute.xlu2 %608 }
 0x2e5   : > { %v610_v5 = vadd.f32 %v609_v4, %v607_v1 }
 0x2e7   : > { %v623_v6 = vmul.f32 0.001953125, %v610_v5 }
 0x2e9   : > { %v625_v9 = vmul.f32 %v623_v6, %v623_v6 }
 0x2fe   : > { %v621_v7 = vpop.permute.xlu0 %620 }
 0x2ff   : > { %v622_v8 = vadd.f32 %v621_v7, %v619_v3 }
 0x301   : > { %v624_v10 = vmul.f32 0.001953125, %v622_v8 }
 0x303   : > { %v626_v11 = vsub.f32 %v624_v10, %v625_v9 }
 0x305   : > { %v627_v12 = vmax.f32 %v626_v11, 0.0 }
 0x307   : > { %v628_v13 = vadd.f32 1e-05, %v627_v12 }
 0x309   : > { %874 = vrsqrt.f32 %v628_v13  ;;  %vm635_vm3 = vweird.f32 %v628_v13 }
 0x30f   : > { %v875_v14 = vpop.eup %874 }
 0x310   : > { %v630_v15 = vmul.f32 %v875_v14, %v628_v13  ;;  %vm636_vm2 = vweird.f32 %v875_v14 }
 0x311   : > { %vm637_vm4 = vmor %vm635_vm3, %vm636_vm2 }
 0x312   : > { %v631_v16 = vmul.f32 %v875_v14, %v630_v15 }
 0x314   : > { %v632_v17 = vmul.f32 0.5, %v631_v16 }
 0x316   : > { %v633_v18 = vsub.f32 1.5, %v632_v17 }
 0x318   : > { %v634_v20 = vmul.f32 %v875_v14, %v633_v18 }
 0x31a   : > { %v638_v21 = vsel %vm637_vm4, %v875_v14, %v634_v20 }
 0x31b   : > { %v640_v22 = vmul.f32 %v639_v19, %v638_v21 }
 0x31d   : > { %v642_v24 = vmul.f32 %v640_v22, %v623_v6  ;;  %v644_v25 = vperm.slane %v640_v22, 0 }
 0x31f   : > { %v643_v29 = vsub.f32 %v641_v23, %v642_v24  ;;  %v645_v30 = vmul.f32 %v644_v25, %v1007_v27  ;;  %v646_v31 = vmul.f32 %v644_v25, %v1005_v26  ;;  %v647_v32 = vmul.f32 %v644_v25, %v1009_v28 }
 0x320   : > { %v648_v33 = vmul.f32 %v644_v25, %v1020_v39 }
 0x321   : > { %v650_v34 = vperm.slane %v643_v29, 0 }
 0x323   : > { %v652_v35 = vadd.f32 %v650_v34, %v645_v30  ;;  %v653_v36 = vadd.f32 %v650_v34, %v646_v31  ;;  %v654_v37 = vadd.f32 %v650_v34, %v647_v32  ;;  %v655_v38 = vadd.f32 %v650_v34, %v648_v33 }
 0x325   : > { %v656_v40 = vmax.f32 %v652_v35, 0.0  ;;  %v657_v41 = vmax.f32 %v653_v36, 0.0  ;;  %v658_v42 = vmax.f32 %v654_v37, 0.0  ;;  %v659_v43 = vmax.f32 %v655_v38, 0.0 }
 0x326   : > { %667 = sbr.rel (%p820_p5) target bundleno = 815 (0x32f), region = 48 }
 0x327   : > { %660 = vst [vmem:[#allocation2 + $0x10] sm:$0xff] %v656_v40 }
 0x328   : > { %661 = vst [vmem:[#allocation2] sm:$0xff] %v657_v41 }
 0x329   : > { %662 = vst [vmem:[#allocation2 + $0x18] sm:$0xff] %v658_v42 }
 0x32a   : > { %663 = vst [vmem:[#allocation2 + $0x8] sm:$0xff] %v659_v43 }
 0x32b   : > { %668 = vst [vmem:[%s1060_s5] sm:$0xff] %v656_v40 }
 0x32c   : > { %669 = vst [vmem:[%s1060_s5 + $0x8] sm:$0xff] %v657_v41 }
 0x32d   : > { %670 = vst [vmem:[%s1060_s5 + $0x10] sm:$0xff] %v658_v42 }
 0x32e   : > { %671 = vst [vmem:[%s1060_s5 + $0x18] sm:$0xff] %v659_v43 }
 0x32f PF: > { %s15_s18 = sadd.s32 1, %s882_s18  }
 0x330   : > { %p12_p6 = scmp.ge.s32.totalorder %s15_s18, 4  }
 0x332   :  { %14 = sbr.rel (!%p12_p6) target bundleno = 1 (0x1), region = 80 }

</bundles_post_ra>
